<compile_context>
chip_gen: v7x
topology: tpu7x:2x2x1
jax: 0.10.0
libtpu: 0.0.40
codegen_flags: <defaults>
</compile_context>

<pallas_src>
import functools

import jax
import jax.numpy as jnp
from jax.experimental import pallas as pl
from jax.experimental.pallas import tpu as pltpu


def _mha_kernel(q_ref, k_ref, v_ref, wq_ref, wk_ref, wv_ref, o_ref,
                kh_ref, vh_ref, *, n_heads, scale, mxu_dtype):
    # q_ref : (1, bq, F)      one batch element, one query tile
    # k_ref : (1, Lk, F)      full key sequence (constant index_map over qi)
    # v_ref : (1, Lv, F)      full value sequence
    # w*_ref: (F, H*F)        head-fused projection weights (VMEM resident)
    # o_ref : (1, bq, H*F)    final output layout, single lane-dense store
    # kh_ref: (H, Lk, F)      scratch: projected keys, head-major, MXU dtype
    # vh_ref: (H, Lv, F)      scratch: projected values, head-major, MXU dtype
    f = q_ref.shape[-1]
    h = n_heads
    bq = q_ref.shape[1]

    def to_mxu(x):
        return x.astype(mxu_dtype) if mxu_dtype is not None else x

    # --- K/V projection: only once per batch element (query-tile index == 0). ---
    @pl.when(pl.program_id(1) == 0)
    def _project_kv():
        k = to_mxu(k_ref[0])
        v = to_mxu(v_ref[0])
        wk = to_mxu(wk_ref[...])
        wv = to_mxu(wv_ref[...])
        kh = jnp.dot(k, wk, preferred_element_type=jnp.float32)       # [Lk, H*F]
        vh = jnp.dot(v, wv, preferred_element_type=jnp.float32)       # [Lv, H*F]
        lk, lv = kh.shape[0], vh.shape[0]
        # Head-major layout so the attention matmuls batch over heads with
        # full-width per-head views (no 32-lane column slices); cast once.
        kh_ref[...] = jnp.transpose(kh.reshape(lk, h, f), (1, 0, 2)).astype(kh_ref.dtype)
        vh_ref[...] = jnp.transpose(vh.reshape(lv, h, f), (1, 0, 2)).astype(vh_ref.dtype)

    # --- Q projection (scale folded in), per query tile. ---
    q = to_mxu(q_ref[0])
    wq = to_mxu(wq_ref[...])
    qh = jnp.dot(q, wq, preferred_element_type=jnp.float32) * scale   # [bq, H*F]
    qh = to_mxu(jnp.transpose(qh.reshape(bq, h, f), (1, 0, 2)))       # [H, bq, F]

    kh = kh_ref[...]                                                   # [H, Lk, F]
    vh = vh_ref[...]                                                   # [H, Lv, F]

    # --- Scores + numerically stable softmax (f32), batched over heads. ---
    s = jnp.einsum('hqf,hkf->hqk', qh, kh,
                   preferred_element_type=jnp.float32)                # [H, bq, Lk]
    s = s - jnp.max(s, axis=-1, keepdims=True)
    p = jnp.exp(s)
    denom = jnp.sum(p, axis=-1, keepdims=True)                        # [H, bq, 1]

    # --- PV matmul, then normalize the small [H, bq, F] output. ---
    o = jnp.einsum('hqk,hkf->hqf', to_mxu(p), vh,
                   preferred_element_type=jnp.float32)                # [H, bq, F]
    if mxu_dtype is None:
        # Exact division on the full-precision path.
        o = o / denom
    else:
        # bf16 PV operands already bound accuracy; EUP approx reciprocal is free.
        o = o * pl.reciprocal(denom, approx=True)

    # --- Single lane-dense store of the final [bq, H*F] tile. ---
    o_ref[0] = jnp.transpose(o, (1, 0, 2)).reshape(bq, h * f).astype(o_ref.dtype)


def _pick_block_q(lq, max_block=256):
    """Largest query tile <= max_block that divides Lq (multiple of 8), else Lq."""
    if lq <= max_block:
        return lq
    for bq in range(max_block - max_block % 8, 7, -8):
        if lq % bq == 0:
            return bq
    # TODO(synk): for prime-ish long Lq add a masked tail tile instead of
    # falling back to block_q = Lq (can blow the VMEM budget, esp. on v7x).
    return lq


def _round_up(x, m):
    return -(-x // m) * m


def multi_head_attention(key, query, value, w_key, w_query, w_value, *,
                         n_features, num_heads, mxu_dtype=jnp.bfloat16,
                         block_q_max=256):
    """key/query/value: [B, L, F].  w_*: [F, H*F] (transposed, head-fused view of
    the PyTorch nn.Linear weight [H*F, F]).  Returns [B, Lq, H*F].

    mxu_dtype: operand dtype for all MXU matmuls (accumulation and softmax stay
    f32).  Default bf16 — the throughput dtype on v5e/v6e/v7x.  Pass None for
    full-precision operands.
    """
    B, Lk, F = key.shape
    Lq = query.shape[1]
    Lv = value.shape[1]
    HF = w_key.shape[1]
    assert F == n_features and HF == n_features * num_heads
    assert Lk == Lv, "key and value sequence lengths must match"
    # TODO(synk): softmax runs over the full key length (no padding mask);
    # callers must not pad the key/value sequence.

    scale = 1.0 / (n_features ** 0.5)
    block_q = _pick_block_q(Lq, block_q_max)
    assert Lq % block_q == 0
    grid = (B, Lq // block_q)

    scratch_dtype = jnp.float32 if mxu_dtype is None else mxu_dtype

    q_spec = pl.BlockSpec((1, block_q, F), lambda b, qi: (b, qi, 0))
    kv_spec = pl.BlockSpec((1, Lk, F), lambda b, qi: (b, 0, 0))
    # Constant index_map -> weight blocks are never re-fetched between steps.
    # TODO(synk): at production sizes add pipeline_mode=pl.Buffered(1) so the
    # never-changing weight slabs are not double-buffered.
    w_spec = pl.BlockSpec((F, HF), lambda b, qi: (0, 0))
    out_spec = pl.BlockSpec((1, block_q, HF), lambda b, qi: (b, qi, 0))

    # Rough VMEM budget: double-buffered streamed blocks + weights, the K/V
    # scratch cache, and f32 intermediates.  Cap at 48 MiB so v7x (64 MiB/TC)
    # keeps headroom for double buffers.
    itemsize = jnp.dtype(query.dtype).itemsize
    sitem = jnp.dtype(scratch_dtype).itemsize
    f_pad = _round_up(F, 128)
    hf_pad = _round_up(HF, 128)
    est = 2 * itemsize * (block_q * f_pad + 2 * Lk * f_pad
                          + 3 * F * hf_pad + block_q * hf_pad)
    est += 2 * sitem * num_heads * Lk * f_pad                      # kh/vh scratch
    est += 4 * (2 * num_heads * block_q * Lk                       # s, p
                + 2 * num_heads * block_q * f_pad                  # qh (head-major), o
                + 2 * block_q * hf_pad)                            # qh, out staging
    vmem_limit = None
    if est > 32 * 1024 * 1024:
        vmem_limit = int(min(est + est // 4, 48 * 1024 * 1024))

    # TODO(synk): for long key sequences (Lk >~ 2k on v7x, ~4k on v5e/v6e) add an
    # inner key-tile loop with online softmax (flash-style m/l accumulators) to
    # bound the [H, block_q, Lk] score tile and the K/V scratch.
    # TODO(synk): for self-attention (key is query is value) concatenate the
    # three weights and do one [*, F] x [F, 3*H*F] projection per input tile.

    kernel = functools.partial(_mha_kernel, n_heads=num_heads, scale=scale,
                               mxu_dtype=mxu_dtype)
    return pl.pallas_call(
        kernel,
        out_shape=jax.ShapeDtypeStruct((B, Lq, HF), query.dtype),
        grid_spec=pltpu.PrefetchScalarGridSpec(
            num_scalar_prefetch=0,
            grid=grid,
            in_specs=[q_spec, kv_spec, kv_spec, w_spec, w_spec, w_spec],
            out_specs=out_spec,
            scratch_shapes=[
                pltpu.VMEM((num_heads, Lk, F), scratch_dtype),
                pltpu.VMEM((num_heads, Lv, F), scratch_dtype),
            ],
        ),
        compiler_params=pltpu.CompilerParams(
            # Batch axis may be split across cores; the query-tile axis must
            # stay sequential per core so the K/V scratch cache is valid.
            dimension_semantics=("parallel", "arbitrary"),
            vmem_limit_bytes=vmem_limit,
        ),
    )(query, key, value, w_query, w_key, w_value)


def _reference(key, query, value, w_key, w_query, w_value, *, n_features, num_heads):
    """Plain-JAX reference mirroring the PyTorch forward."""
    B, Lk, F = key.shape
    Lq, Lv = query.shape[1], value.shape[1]
    scale = 1.0 / (n_features ** 0.5)

    def proj(x, w, L):  # x: [B, L, F], w: [F, H*F] -> [B, H, L, F]
        return (x @ w).reshape(B, L, num_heads, F).transpose(0, 2, 1, 3)

    q = proj(query, w_query, Lq)
    k = proj(key, w_key, Lk)
    v = proj(value, w_value, Lv)
    s = jnp.einsum("bhqf,bhkf->bhqk", q, k) * scale
    p = jax.nn.softmax(s, axis=-1)
    o = jnp.einsum("bhqk,bhkf->bhqf", p, v)
    return o.transpose(0, 2, 1, 3).reshape(B, Lq, num_heads * F)


if __name__ == "__main__":
    # Small shapes: batch=2, seq=8, n_features=32, num_heads=4
    B, L, F, H = 2, 8, 32, 4

    k0 = jax.random.PRNGKey(0)
    k_in, q_in, v_in, kw1, kw2, kw3 = jax.random.split(k0, 6)

    key = jax.random.normal(k_in, (B, L, F), dtype=jnp.float32)
    query = jax.random.normal(q_in, (B, L, F), dtype=jnp.float32)
    value = jax.random.normal(v_in, (B, L, F), dtype=jnp.float32)

    # nn.Linear(F, F*H, bias=False) has weight [H*F, F]; the kernel consumes its
    # transpose [F, H*F] (columns ordered head-major, then feature), matching
    # the PyTorch .view(B, L, H, F) split.
    w_scale = 1.0 / (F ** 0.5)
    w_key_p = jax.random.uniform(kw1, (F, H * F), jnp.float32, -w_scale, w_scale)
    w_query_p = jax.random.uniform(kw2, (F, H * F), jnp.float32, -w_scale, w_scale)
    w_value_p = jax.random.uniform(kw3, (F, H * F), jnp.float32, -w_scale, w_scale)

    ref = _reference(key, query, value, w_key_p, w_query_p, w_value_p,
                     n_features=F, num_heads=H)

    # Full-precision MXU operand path (exact softmax divide).
    out_f32 = multi_head_attention(key, query, value, w_key_p, w_query_p, w_value_p,
                                   n_features=F, num_heads=H, mxu_dtype=None)
    out_f32 = jax.block_until_ready(out_f32)
    assert out_f32.shape == (B, L, H * F), out_f32.shape
    assert jnp.allclose(out_f32, ref, atol=2e-3, rtol=2e-3), "f32 path mismatch vs reference"

    # Default path: bf16 MXU operands, f32 accumulation / softmax.
    out_bf16 = multi_head_attention(key, query, value, w_key_p, w_query_p, w_value_p,
                                    n_features=F, num_heads=H)
    out_bf16 = jax.block_until_ready(out_bf16)
    assert out_bf16.shape == (B, L, H * F), out_bf16.shape
    assert jnp.allclose(out_bf16, ref, atol=5e-2, rtol=5e-2), "bf16 path mismatch vs reference"

    print("KERNEL_OK")
</pallas_src>

<mosaic_0001>
module attributes {stable_mosaic.version = 11 : i64} {
  func.func @_mha_kernel(%arg0: i32, %arg1: i32, %arg2: memref<1x8x32xf32, #tpu.memory_space<vmem>>, %arg3: memref<1x8x32xf32, #tpu.memory_space<vmem>>, %arg4: memref<1x8x32xf32, #tpu.memory_space<vmem>>, %arg5: memref<32x128xf32, #tpu.memory_space<vmem>>, %arg6: memref<32x128xf32, #tpu.memory_space<vmem>>, %arg7: memref<32x128xf32, #tpu.memory_space<vmem>>, %arg8: memref<1x8x128xf32, #tpu.memory_space<vmem>>, %arg9: memref<4x8x32xf32, #tpu.memory_space<vmem>>, %arg10: memref<4x8x32xf32, #tpu.memory_space<vmem>>) attributes {dimension_semantics = [#tpu.dimension_semantics<parallel>, #tpu.dimension_semantics<arbitrary>], iteration_bounds = array<i64: 2, 1>, scalar_prefetch = 0 : i64, scratch_operands = 2 : i64, tpu.core_type = #tpu.core_type<tc>, window_params = [{transform_indices = @transform_0, window_bounds = array<i64: 1, 8, 32>}, {transform_indices = @transform_1, window_bounds = array<i64: 1, 8, 32>}, {transform_indices = @transform_2, window_bounds = array<i64: 1, 8, 32>}, {pipeline_mode = #tpu.pipeline_mode<synchronous>, transform_indices = @transform_3, window_bounds = array<i64: 32, 128>}, {pipeline_mode = #tpu.pipeline_mode<synchronous>, transform_indices = @transform_4, window_bounds = array<i64: 32, 128>}, {pipeline_mode = #tpu.pipeline_mode<synchronous>, transform_indices = @transform_5, window_bounds = array<i64: 32, 128>}, {transform_indices = @transform_6, window_bounds = array<i64: 1, 8, 128>}]} {
    %c0_i32 = arith.constant 0 : i32
    %0 = arith.cmpi eq, %arg1, %c0_i32 : i32
    %1 = arith.extui %0 : i1 to i32
    %c0_i32_0 = arith.constant 0 : i32
    %2 = arith.cmpi ne, %1, %c0_i32_0 : i32
    scf.if %2 {
      %c0_19 = arith.constant 0 : index
      %c0_20 = arith.constant 0 : index
      %c0_21 = arith.constant 0 : index
      %29 = vector.load %arg3[%c0_19, %c0_20, %c0_21] : memref<1x8x32xf32, #tpu.memory_space<vmem>>, vector<1x8x32xf32>
      %30 = vector.shape_cast %29 : vector<1x8x32xf32> to vector<8x32xf32>
      %c0_22 = arith.constant 0 : index
      %c0_23 = arith.constant 0 : index
      %c0_24 = arith.constant 0 : index
      %31 = vector.load %arg4[%c0_22, %c0_23, %c0_24] : memref<1x8x32xf32, #tpu.memory_space<vmem>>, vector<1x8x32xf32>
      %32 = vector.shape_cast %31 : vector<1x8x32xf32> to vector<8x32xf32>
      %c0_25 = arith.constant 0 : index
      %c0_26 = arith.constant 0 : index
      %33 = vector.load %arg6[%c0_25, %c0_26] : memref<32x128xf32, #tpu.memory_space<vmem>>, vector<32x128xf32>
      %c0_27 = arith.constant 0 : index
      %c0_28 = arith.constant 0 : index
      %34 = vector.load %arg7[%c0_27, %c0_28] : memref<32x128xf32, #tpu.memory_space<vmem>>, vector<32x128xf32>
      %cst_29 = arith.constant dense<0.000000e+00> : vector<8x128xf32>
      %35 = tpu.matmul %30, %33, %cst_29 {dimension_numbers = #tpu.dot_dimension_numbers<[1], [0], [0], [1], [0, 0, 1, 1], [], []>} : vector<8x32xf32>, vector<32x128xf32>, vector<8x128xf32> -> vector<8x128xf32>
      %cst_30 = arith.constant dense<0.000000e+00> : vector<8x128xf32>
      %36 = tpu.matmul %32, %34, %cst_30 {dimension_numbers = #tpu.dot_dimension_numbers<[1], [0], [0], [1], [0, 0, 1, 1], [], []>} : vector<8x32xf32>, vector<32x128xf32>, vector<8x128xf32> -> vector<8x128xf32>
      %37 = vector.shape_cast %35 : vector<8x128xf32> to vector<8x4x32xf32>
      %38 = tpu.transpose %37, [1, 0, 2] : vector<8x4x32xf32> -> vector<4x8x32xf32>
      %c0_31 = arith.constant 0 : index
      %c0_32 = arith.constant 0 : index
      %c0_33 = arith.constant 0 : index
      %39 = vector.load %arg9[%c0_31, %c0_32, %c0_33] : memref<4x8x32xf32, #tpu.memory_space<vmem>>, vector<4x8x32xf32>
      tpu.vector_store %arg9[%c0_31, %c0_32, %c0_33], %38 {strides = array<i32>} : memref<4x8x32xf32, #tpu.memory_space<vmem>>, vector<4x8x32xf32>,
      %40 = vector.shape_cast %36 : vector<8x128xf32> to vector<8x4x32xf32>
      %41 = tpu.transpose %40, [1, 0, 2] : vector<8x4x32xf32> -> vector<4x8x32xf32>
      %c0_34 = arith.constant 0 : index
      %c0_35 = arith.constant 0 : index
      %c0_36 = arith.constant 0 : index
      %42 = vector.load %arg10[%c0_34, %c0_35, %c0_36] : memref<4x8x32xf32, #tpu.memory_space<vmem>>, vector<4x8x32xf32>
      tpu.vector_store %arg10[%c0_34, %c0_35, %c0_36], %41 {strides = array<i32>} : memref<4x8x32xf32, #tpu.memory_space<vmem>>, vector<4x8x32xf32>,
    } else {
    }
    %c0 = arith.constant 0 : index
    %c0_1 = arith.constant 0 : index
    %c0_2 = arith.constant 0 : index
    %3 = vector.load %arg2[%c0, %c0_1, %c0_2] : memref<1x8x32xf32, #tpu.memory_space<vmem>>, vector<1x8x32xf32>
    %4 = vector.shape_cast %3 : vector<1x8x32xf32> to vector<8x32xf32>
    %c0_3 = arith.constant 0 : index
    %c0_4 = arith.constant 0 : index
    %5 = vector.load %arg5[%c0_3, %c0_4] : memref<32x128xf32, #tpu.memory_space<vmem>>, vector<32x128xf32>
    %cst = arith.constant dense<0.000000e+00> : vector<8x128xf32>
    %6 = tpu.matmul %4, %5, %cst {dimension_numbers = #tpu.dot_dimension_numbers<[1], [0], [0], [1], [0, 0, 1, 1], [], []>} : vector<8x32xf32>, vector<32x128xf32>, vector<8x128xf32> -> vector<8x128xf32>
    %cst_5 = arith.constant 0.176776692 : f32
    %7 = vector.broadcast %cst_5 : f32 to vector<8x128xf32>
    %8 = arith.mulf %6, %7 : vector<8x128xf32>
    %9 = vector.shape_cast %8 : vector<8x128xf32> to vector<8x4x32xf32>
    %10 = tpu.transpose %9, [1, 0, 2] : vector<8x4x32xf32> -> vector<4x8x32xf32>
    %c0_6 = arith.constant 0 : index
    %c0_7 = arith.constant 0 : index
    %c0_8 = arith.constant 0 : index
    %11 = vector.load %arg9[%c0_6, %c0_7, %c0_8] : memref<4x8x32xf32, #tpu.memory_space<vmem>>, vector<4x8x32xf32>
    %c0_9 = arith.constant 0 : index
    %c0_10 = arith.constant 0 : index
    %c0_11 = arith.constant 0 : index
    %12 = vector.load %arg10[%c0_9, %c0_10, %c0_11] : memref<4x8x32xf32, #tpu.memory_space<vmem>>, vector<4x8x32xf32>
    "tpu.trace_start"() <{level = 10 : i32, message = "hqf,hkf->hqk"}> : () -> ()
    %cst_12 = arith.constant dense<0.000000e+00> : vector<4x8x8xf32>
    %13 = tpu.matmul %10, %11, %cst_12 {dimension_numbers = #tpu.dot_dimension_numbers<[2], [2], [1], [1], [0, 0, 0, 1, 1, 1], [0], [0]>} : vector<4x8x32xf32>, vector<4x8x32xf32>, vector<4x8x8xf32> -> vector<4x8x8xf32>
    "tpu.trace_stop"() : () -> ()
    %cst_13 = arith.constant dense<0xFF800000> : vector<4x8xf32>
    %14 = vector.multi_reduction <maximumf>, %13, %cst_13 [2] : vector<4x8x8xf32> to vector<4x8xf32>
    %15 = vector.shape_cast %14 : vector<4x8xf32> to vector<4x8x1xf32>
    %16 = vector.broadcast %15 : vector<4x8x1xf32> to vector<4x8x8xf32>
    %17 = arith.subf %13, %16 : vector<4x8x8xf32>
    %18 = math.exp %17 : vector<4x8x8xf32>
    %cst_14 = arith.constant dense<0.000000e+00> : vector<4x8xf32>
    %19 = vector.multi_reduction <add>, %18, %cst_14 [2] : vector<4x8x8xf32> to vector<4x8xf32>
    %20 = vector.shape_cast %19 : vector<4x8xf32> to vector<4x8x1xf32>
    "tpu.trace_start"() <{level = 10 : i32, message = "hqk,hkf->hqf"}> : () -> ()
    %cst_15 = arith.constant dense<0.000000e+00> : vector<4x8x32xf32>
    %21 = tpu.matmul %18, %12, %cst_15 {dimension_numbers = #tpu.dot_dimension_numbers<[2], [1], [1], [2], [0, 0, 0, 1, 1, 2], [0], [0]>} : vector<4x8x8xf32>, vector<4x8x32xf32>, vector<4x8x32xf32> -> vector<4x8x32xf32>
    "tpu.trace_stop"() : () -> ()
    %22 = vector.broadcast %20 : vector<4x8x1xf32> to vector<4x8x32xf32>
    %23 = arith.divf %21, %22 : vector<4x8x32xf32>
    %24 = tpu.transpose %23, [1, 0, 2] : vector<4x8x32xf32> -> vector<8x4x32xf32>
    %25 = vector.shape_cast %24 : vector<8x4x32xf32> to vector<8x128xf32>
    %c0_16 = arith.constant 0 : index
    %c0_17 = arith.constant 0 : index
    %c0_18 = arith.constant 0 : index
    %26 = vector.load %arg8[%c0_16, %c0_17, %c0_18] : memref<1x8x128xf32, #tpu.memory_space<vmem>>, vector<1x8x128xf32>
    %27 = vector.shape_cast %26 : vector<1x8x128xf32> to vector<8x128xf32>
    %28 = vector.shape_cast %25 : vector<8x128xf32> to vector<1x8x128xf32>
    tpu.vector_store %arg8[%c0_16, %c0_17, %c0_18], %28 {strides = array<i32>} : memref<1x8x128xf32, #tpu.memory_space<vmem>>, vector<1x8x128xf32>,
    return
  }
  func.func @transform_0(%arg0: i32, %arg1: i32) -> (i32, i32, i32) {
    %c0_i32 = arith.constant 0 : i32
    %c0_i32_0 = arith.constant 0 : i32
    return %arg0, %arg1, %c0_i32 : i32, i32, i32
  }
  func.func @transform_1(%arg0: i32, %arg1: i32) -> (i32, i32, i32) {
    %c0_i32 = arith.constant 0 : i32
    %c0_i32_0 = arith.constant 0 : i32
    %c0_i32_1 = arith.constant 0 : i32
    return %arg0, %c0_i32, %c0_i32_0 : i32, i32, i32
  }
  func.func @transform_2(%arg0: i32, %arg1: i32) -> (i32, i32, i32) {
    %c0_i32 = arith.constant 0 : i32
    %c0_i32_0 = arith.constant 0 : i32
    %c0_i32_1 = arith.constant 0 : i32
    return %arg0, %c0_i32, %c0_i32_0 : i32, i32, i32
  }
  func.func @transform_3(%arg0: i32, %arg1: i32) -> (i32, i32) {
    %c0_i32 = arith.constant 0 : i32
    %c0_i32_0 = arith.constant 0 : i32
    %c0_i32_1 = arith.constant 0 : i32
    return %c0_i32, %c0_i32_0 : i32, i32
  }
  func.func @transform_4(%arg0: i32, %arg1: i32) -> (i32, i32) {
    %c0_i32 = arith.constant 0 : i32
    %c0_i32_0 = arith.constant 0 : i32
    %c0_i32_1 = arith.constant 0 : i32
    return %c0_i32, %c0_i32_0 : i32, i32
  }
  func.func @transform_5(%arg0: i32, %arg1: i32) -> (i32, i32) {
    %c0_i32 = arith.constant 0 : i32
    %c0_i32_0 = arith.constant 0 : i32
    %c0_i32_1 = arith.constant 0 : i32
    return %c0_i32, %c0_i32_0 : i32, i32
  }
  func.func @transform_6(%arg0: i32, %arg1: i32) -> (i32, i32, i32) {
    %c0_i32 = arith.constant 0 : i32
    %c0_i32_0 = arith.constant 0 : i32
    return %arg0, %arg1, %c0_i32 : i32, i32, i32
  }
}

</mosaic_0001>

<bundles_post_ra>
// kernel: tpu_custom_call.1
= control target key start
LH: loop header
LB: loop body
LE: loop exit
PB: predicated region body
PF: predicated region fallthrough
CT: control target
= control target key end

     0   :  { %s3172_s0 = inlined_call_operand.hbm [shape: f32[2,8,32], index: 0, kind: input, shape index: {}]   ;;  %s3173_s1 = inlined_call_operand.hbm [shape: f32[2,8,32], index: 1, kind: input, shape index: {}]   ;;  %s3174_s2 = inlined_call_operand.hbm [shape: f32[2,8,32], index: 2, kind: input, shape index: {}]   ;;  %s3175_s3 = inlined_call_operand.hbm [shape: f32[32,128], index: 3, kind: input, shape index: {}]   ;;  %s3176_s4 = inlined_call_operand.hbm [shape: f32[32,128], index: 4, kind: input, shape index: {}]   ;;  %s3177_s5 = inlined_call_operand.hbm [shape: f32[32,128], index: 5, kind: input, shape index: {}]   ;;  %s3178_s6 = inlined_call_operand.hbm [shape: f32[2,8,128], index: 6, kind: output, shape index: {}]  }
   0x1   :  { %3205 = sst [smem:[#allocation28_spill]] %s3173_s1 }
   0x2   :  { %3206 = sst [smem:[#allocation29_spill]] %s3175_s3 }
   0x3   :  { %3207 = sst [smem:[#allocation30_spill]] %s3178_s6 }
   0x4   :  { %11 = vsyncpa [#allocation5], 0 }
   0x5   :  { %13 = vsyncpa [#allocation5 + $0x1], 0 }
   0x6   :  { %14 = vsyncpa [#allocation8], 0 }
   0x7   :  { %16 = vsyncpa [#allocation8 + $0x1], 0 }
   0x8   :  { %17 = vsyncpa [#allocation11], 0 }
   0x9   :  { %18 = vsyncpa [#allocation14], 0 }
   0xa   :  { %19 = vsyncpa [#allocation6], 0 }
   0xb   :  { %21 = vsyncpa [#allocation6 + $0x1], 0  ;;  %s2677_s21 = smov 0   ;;  %s2679_s22 = smov 0  }
   0xc   :  { %s2681_s23 = smov 0   ;;  %s2683_s24 = smov 0  }
   0xd   :  { %s2685_s25 = smov 0   ;;  %s2687_s26 = smov 0  }
   0xe LB: > { %3208 = sst [smem:[#allocation21_spill]] %s2603_s21  ;;  %s2708_s27 = sadd.s32 4294967295, %s2623_s26   ;;  %s2623_s26 = sphi %s2687_s26, %s27_s26   ;;  %s2619_s25 = sphi %s2685_s25, %s3250_s25   ;;  %s2615_s24 = sphi %s2683_s24, %s3249_s24   ;;  %s2611_s23 = sphi %s2681_s23, %s3253_s23   ;;  %s2607_s22 = sphi %s2679_s22, %s3252_s22   ;;  %s2603_s21 = sphi %s2677_s21, %s3251_s21  }
   0xf   : > { %3209 = sst [smem:[#allocation22_spill]] %s2619_s25  ;;  %s2057_s28 = sadd.s32 4294967294, %s2623_s26  }
  0x10   : > { %3210 = sst [smem:[#allocation23_spill]] %s2623_s26  ;;  %p61_p0 = scmp.ne.s32.totalorder %s2607_s22, %s2603_s21 }
  0x11   : > { %p3179_p1 = scmp.eq.s32.totalorder %s2708_s27, 0  ;;  %p208_p3 = scmp.eq.s32.totalorder %s2057_s28, 1 }
  0x12   : > { %p2058_p5 = scmp.ge.s32.totalorder %s2623_s26, 1  ;;  %p215_p7 = scmp.lt.s32.totalorder %s2623_s26, 3 }
  0x13   : > { %p2717_p4 = por %p3179_p1, %p61_p0  ;;  %p2722_p6 = por %p208_p3, %p61_p0 }
  0x14   : > { %p2727_p8 = pnand %p2058_p5, %p215_p7  ;;  %s2625_s8 = smov [#allocation10]  }
  0x15   : > { %s3211_s29 = scalar_select %p2717_p4, 1, 0 }
  0x16   : > { %s3212_s30 = scalar_select %p2722_p6, 1, 0 }
  0x17   : > { %s3214_s7 = scalar_select %p2727_p8, 1, 0 }
  0x18   : > { %3213 = sst [smem:[#allocation24_spill]] %s3212_s30  ;;  %s227_s9 = sshll.u32 %s2625_s8, 4  ;;  %s228_s9 = int_to_ptr.vmem [resolvable:$true] %s227_s9 }
  0x19   : > { %p2246_p9 = pneg %p2727_p8  ;;  %s39_s11 = sadd.s32 1, %s2619_s25 }
  0x1a   : > { %s3216_s3 = sld [smem:[#allocation29_spill]] }
  0x1b   : > { %p2736_p11 = pnand %p2246_p9, %p3179_p1 }
  0x1d   : > { %s3215_s10 = scalar_select %p2736_p11, 1, 0 }
  0x1e   : > { %p2749_p13 = pneg %p2736_p11 }
  0x20   : > { %s2355_s14 = scalar_lea.hbm %s3216_s3, 512 }
  0x21   : > { %p2356_p12 = scmp.ne.s32.totalorder %s3216_s3, %s2355_s14  ;;  %p2362_p5 = scmp.lt.u32.totalorder %s2355_s14, %s3216_s3 }
  0x22   : > { %s3217_s17 = scalar_select %p2749_p13, 1, 0 }
  0x23   : > { %p2358_p0 = pnand %p2749_p13, %p2356_p12 }
  0x25   : > { %p2359_p3 = pneg %p2358_p0 }
  0x27   : > { %p2364_p7 = pnand %p2362_p5, %p2359_p3 }
  0x29   : > { %2367 = shalt.err (!%p2364_p7)
}
  0x2a   : > { %s2368_s20 = scalar_lea.vmem %s228_s9, 512  ;;  %p2376_p2 = scmp.lt.s32.totalorder %s228_s9, %s228_s9 }
  0x2b   : > { %p2369_p9 = scmp.ne.s32.totalorder %s228_s9, %s2368_s20  ;;  %p2377_p6 = scmp.lt.s32.totalorder %s2368_s20, %s2368_s20 }
  0x2d   : > { %p2371_p10 = pnand %p2369_p9, %p2749_p13  ;;  %p2378_p4 = por %p2377_p6, %p2376_p2 }
  0x2f   : > { %p2372_p1 = pneg %p2371_p10 }
  0x31   : > { %p2379_p8 = pnand %p2378_p4, %p2372_p1 }
  0x33   : > { %2382 = shalt.err (!%p2379_p8)
}
  0x34   : > { %s3182_s28 = smov 128   ;;  %s3184_s8 = smov 8  }
  0x35   : > { %2249 = dma.hbm_to_vmem [thread:$0]  (!%p2736_p11), %s3216_s3, 512, %s228_s9, [#allocation11], %s3182_s28, %s3182_s28, %s3184_s8  }
  0x36   : > { %p41_p1 = scmp.ge.s32.totalorder %s39_s11, 2  ;;  %s48_s14 = sadd.s32 1, %s2611_s23 }
  0x37   : > { %p55_p2 = scmp.ne.s32.totalorder %s2611_s23, %s2607_s22  ;;  %p56_p4 = scmp.eq.s32.totalorder %s2623_s26, 0 }
  0x38   : > { %s3255_s11 = smov (%p41_p1, %s39_s11), 0  ;;  %p3219_p8 = scmp.eq.s32.totalorder %s2708_s27, 1 }
  0x39   : > { %3218 = sst [smem:[#allocation25_spill]] %s3255_s11  ;;  %p57_p6 = por %p56_p4, %p55_p2 }
  0x3a   : > { %p2776_p10 = por %p3219_p8, %p55_p2  ;;  %s43_s16 = ssub.s32 %s2619_s25, %s3255_s11 }
  0x3b   : > { %p2273_p12 = scmp.lt.s32.totalorder %s2623_s26, 2  ;;  %p46_p0 = scmp.eq.s32.totalorder %s43_s16, 0 }
  0x3c   : > { %s3220_s15 = scalar_select %p2776_p10, 1, 0 }
  0x3d   : > { %s3186_s18 = sand.u32 1, %s2611_s23   ;;  %s2789_s19 = sshll.u32 %s2619_s25, 7 }
  0x3e   : > { %3221 = sst [smem:[#allocation26_spill]] %s3220_s15  ;;  %s2786_s9 = sshll.u32 %s3186_s18, 3 }
  0x3f   : > { %s2792_s20 = scalar_select %p46_p0, %s2611_s23, %s48_s14  }
  0x40   : > { %p2794_p3 = pnand %p2273_p12, %p57_p6  ;;  %s286_s13 = sand.u32 1, %s2623_s26  }
  0x41   : > { %3222 = sst [smem:[#allocation27_spill]] %s2792_s20  ;;  %s3224_s1 = sld [smem:[#allocation28_spill]] }
  0x42   : > { %s3223_s12 = scalar_select %p2794_p3, 1, 0 }
  0x43   : > { %s290_s18 = scalar_lea.vmem [#allocation7], %s2786_s9  ;;  %s2628_s14 = smov [#allocation12]  }
  0x44   : > { %s297_s3 = sshll.u32 %s290_s18, 4  ;;  %s2808_s11 = sshll.u32 %s2628_s14, 4  ;;  %s2806_s3 = int_to_ptr.vmem [resolvable:$true] %s297_s3  ;;  %s241_s11 = int_to_ptr.vmem [resolvable:$true] %s2808_s11 }
  0x45   : > { %s2810_s25 = scalar_lea.sflag [#allocation8], %s286_s13  ;;  %p2816_p7 = pneg %p2794_p3 }
  0x47   : > { %s2803_s16 = scalar_lea.hbm %s3224_s1, %s2789_s19  ;;  %s2388_s26 = scalar_lea.hbm %s3224_s1, 256 }
  0x48   : > { %s2383_s20 = scalar_lea.hbm %s2803_s16, 128  ;;  %p2389_p2 = scmp.lt.u32.totalorder %s2803_s16, %s3224_s1 }
  0x49   : > { %p2384_p5 = scmp.ne.s32.totalorder %s2803_s16, %s2383_s20  ;;  %p2390_p4 = scmp.lt.u32.totalorder %s2388_s26, %s2383_s20 }
  0x4a   : > { %s3225_s28 = scalar_select %p2816_p7, 1, 0 }
  0x4b   : > { %p2386_p9 = pnand %p2816_p7, %p2384_p5  ;;  %p2391_p6 = por %p2390_p4, %p2389_p2 }
  0x4c   : > { %p2392_p8 = scmp.lt.u32.totalorder %s2383_s20, %s2803_s16 }
  0x4d   : > { %p2387_p1 = pneg %p2386_p9 }
  0x4e   : > { %p2393_p12 = por %p2392_p8, %p2391_p6 }
  0x50   : > { %p2394_p0 = pnand %p2393_p12, %p2387_p1 }
  0x52   : > { %2397 = shalt.err (!%p2394_p0)
}
  0x53   : > { %s2398_s13 = scalar_lea.vmem %s2806_s3, 128  ;;  %s2629_s8 = smov [#allocation7]  }
  0x54   : > { %p2399_p5 = scmp.ne.s32.totalorder %s2806_s3, %s2398_s13  ;;  %s2403_s18 = sshll.u32 %s2629_s8, 4  ;;  %s2404_s18 = int_to_ptr.vmem [resolvable:$false] %s2403_s18 }
  0x55   : > { %s2405_s30 = scalar_lea.vmem %s2404_s18, 256  ;;  %p2406_p11 = scmp.lt.s32.totalorder %s2806_s3, %s2404_s18 }
  0x56   : > { %p2401_p9 = pnand %p2399_p5, %p2816_p7  ;;  %p2407_p13 = scmp.lt.s32.totalorder %s2405_s30, %s2398_s13 }
  0x58   : > { %p2402_p10 = pneg %p2401_p9  ;;  %p2408_p2 = por %p2407_p13, %p2406_p11 }
  0x5a   : > { %p2409_p4 = pnand %p2408_p2, %p2402_p10 }
  0x5c   : > { %2412 = shalt.err (!%p2409_p4)
}
  0x5d   : > { %2262 = dma.hbm_to_vmem [thread:$0]  (!%p2794_p3), %s2803_s16, 128, %s2806_s3, %s2810_s25  }
  0x5e   : > { %s2413_s14 = scalar_lea.hbm %s3176_s4, 512  ;;  %p3226_p11 = scmp.ne.s32.totalorder %s3217_s17, 0 }
  0x5f   : > { %p2414_p1 = scmp.ne.s32.totalorder %s3176_s4, %s2413_s14  ;;  %p2420_p6 = scmp.lt.u32.totalorder %s2413_s14, %s3176_s4 }
  0x61   : > { %p2416_p13 = pnand %p2414_p1, %p3226_p11 }
  0x63   : > { %p2417_p10 = pneg %p2416_p13 }
  0x65   : > { %p2422_p8 = pnand %p2420_p6, %p2417_p10 }
  0x67   : > { %2425 = shalt.err (!%p2422_p8)
}
  0x68   : > { %s2426_s30 = scalar_lea.vmem %s241_s11, 512  ;;  %p2434_p9 = scmp.lt.s32.totalorder %s241_s11, %s241_s11 }
  0x69   : > { %p2427_p12 = scmp.ne.s32.totalorder %s241_s11, %s2426_s30  ;;  %p2435_p2 = scmp.lt.s32.totalorder %s2426_s30, %s2426_s30 }
  0x6b   : > { %p2429_p0 = pnand %p2427_p12, %p3226_p11  ;;  %p2436_p4 = por %p2435_p2, %p2434_p9 }
  0x6d   : > { %p2430_p5 = pneg %p2429_p0 }
  0x6f   : > { %p2437_p3 = pnand %p2436_p4, %p2430_p5 }
  0x71   : > { %2440 = shalt.err (!%p2437_p3)
}
  0x72   : > { %p3227_p1 = scmp.ne.s32.totalorder %s3215_s10, 0  ;;  %s3228_s1 = smov 8  }
  0x73   : > { %s3229_s3 = smov 128   ;;  %s2630_s20 = smov [#allocation13]  }
  0x74   : > { %2252 = dma.hbm_to_vmem [thread:$0]  (!%p3227_p1), %s3176_s4, 512, %s241_s11, [#allocation11], %s3229_s3, %s3229_s3, %s3228_s1  }
  0x75   : > { %s253_s14 = sshll.u32 %s2630_s20, 4  ;;  %s2441_s18 = scalar_lea.hbm %s3177_s5, 512  ;;  %s254_s14 = int_to_ptr.vmem [resolvable:$true] %s253_s14 }
  0x76   : > { %p2442_p3 = scmp.ne.s32.totalorder %s3177_s5, %s2441_s18  ;;  %p2448_p6 = scmp.lt.u32.totalorder %s2441_s18, %s3177_s5 }
  0x78   : > { %p2444_p13 = pnand %p2442_p3, %p3226_p11 }
  0x7a   : > { %p2445_p10 = pneg %p2444_p13 }
  0x7c   : > { %p2450_p8 = pnand %p2448_p6, %p2445_p10 }
  0x7e   : > { %2453 = shalt.err (!%p2450_p8)
}
  0x7f   : > { %s2454_s11 = scalar_lea.vmem %s254_s14, 512  ;;  %p2462_p9 = scmp.lt.s32.totalorder %s254_s14, %s254_s14 }
  0x80   : > { %p2455_p12 = scmp.ne.s32.totalorder %s254_s14, %s2454_s11  ;;  %p2463_p2 = scmp.lt.s32.totalorder %s2454_s11, %s2454_s11 }
  0x82   : > { %p2457_p0 = pnand %p2455_p12, %p3226_p11  ;;  %p2464_p4 = por %p2463_p2, %p2462_p9 }
  0x84   : > { %p2458_p5 = pneg %p2457_p0 }
  0x86   : > { %p2465_p7 = pnand %p2464_p4, %p2458_p5 }
  0x88   : > { %2468 = shalt.err (!%p2465_p7)
}
  0x89   : > { %2255 = dma.hbm_to_vmem [thread:$0]  (!%p3227_p1), %s3177_s5, 512, %s254_s14, [#allocation14], %s3229_s3, %s3229_s3, %s3228_s1  }
  0x8a   : > { %s2887_s16 = scalar_lea.hbm %s3172_s0, %s2789_s19  ;;  %s271_s10 = scalar_lea.vmem [#allocation4], %s2786_s9 }
  0x8b   : > { %s279_s26 = sshll.u32 %s271_s10, 4  ;;  %s3230_s20 = sand.u32 1, %s2611_s23   ;;  %s280_s26 = int_to_ptr.vmem [resolvable:$true] %s279_s26 }
  0x8c   : > { %s268_s8 = scalar_lea.sflag [#allocation5], %s3230_s20  ;;  %s2469_s13 = scalar_lea.hbm %s2887_s16, 128 }
  0x8d   : > { %p2470_p7 = scmp.ne.s32.totalorder %s2887_s16, %s2469_s13  ;;  %p3231_p11 = scmp.ne.s32.totalorder %s3225_s28, 0 }
  0x8e   : > { %s2474_s14 = scalar_lea.hbm %s3172_s0, 256  ;;  %p2475_p1 = scmp.lt.u32.totalorder %s2887_s16, %s3172_s0 }
  0x8f   : > { %p2472_p3 = pnand %p2470_p7, %p3231_p11  ;;  %p2476_p10 = scmp.lt.u32.totalorder %s2474_s14, %s2469_s13 }
  0x90   : > { %p2478_p8 = scmp.lt.u32.totalorder %s2469_s13, %s2887_s16 }
  0x91   : > { %p2473_p13 = pneg %p2472_p3  ;;  %p2477_p6 = por %p2476_p10, %p2475_p1 }
  0x93   : > { %p2479_p12 = por %p2478_p8, %p2477_p6 }
  0x95   : > { %p2480_p0 = pnand %p2479_p12, %p2473_p13 }
  0x97   : > { %2483 = shalt.err (!%p2480_p0)
}
  0x98   : > { %s2484_s11 = scalar_lea.vmem %s280_s26, 128  ;;  %s2631_s6 = smov [#allocation4]  }
  0x99   : > { %p2485_p5 = scmp.ne.s32.totalorder %s280_s26, %s2484_s11  ;;  %s2489_s21 = sshll.u32 %s2631_s6, 4  ;;  %s2490_s21 = int_to_ptr.vmem [resolvable:$false] %s2489_s21 }
  0x9a   : > { %s2491_s17 = scalar_lea.vmem %s2490_s21, 256  ;;  %p2492_p4 = scmp.lt.s32.totalorder %s280_s26, %s2490_s21 }
  0x9b   : > { %p2487_p9 = pnand %p2485_p5, %p3231_p11  ;;  %p2493_p7 = scmp.lt.s32.totalorder %s2491_s17, %s2484_s11 }
  0x9d   : > { %p2488_p2 = pneg %p2487_p9  ;;  %p2494_p3 = por %p2493_p7, %p2492_p4 }
  0x9f   : > { %p2495_p1 = pnand %p2494_p3, %p2488_p2 }
  0xa1   : > { %2498 = shalt.err (!%p2495_p1)
}
  0xa2   : > { %p3232_p10 = scmp.ne.s32.totalorder %s3223_s12, 0  ;;  %s2913_s20 = scalar_lea.hbm %s3174_s2, %s2789_s19 }
  0xa3   : > { %s308_s13 = scalar_lea.vmem [#allocation9], %s2786_s9  ;;  %s2499_s3 = scalar_lea.hbm %s2913_s20, 128 }
  0xa4   : > { %2259 = dma.hbm_to_vmem [thread:$0]  (!%p3232_p10), %s2887_s16, 128, %s280_s26, %s268_s8  }
  0xa5   : > { %s315_s1 = sshll.u32 %s308_s13, 4  ;;  %p2500_p13 = scmp.ne.s32.totalorder %s2913_s20, %s2499_s3  ;;  %s316_s1 = int_to_ptr.vmem [resolvable:$true] %s315_s1 }
  0xa6   : > { %s2504_s16 = scalar_lea.hbm %s3174_s2, 256  ;;  %p2505_p12 = scmp.lt.u32.totalorder %s2913_s20, %s3174_s2 }
  0xa7   : > { %p2502_p6 = pnand %p2500_p13, %p3231_p11  ;;  %p2506_p0 = scmp.lt.u32.totalorder %s2504_s16, %s2499_s3 }
  0xa8   : > { %p2508_p9 = scmp.lt.u32.totalorder %s2499_s3, %s2913_s20 }
  0xa9   : > { %p2503_p8 = pneg %p2502_p6  ;;  %p2507_p5 = por %p2506_p0, %p2505_p12 }
  0xab   : > { %p2509_p2 = por %p2508_p9, %p2507_p5 }
  0xad   : > { %p2510_p4 = pnand %p2509_p2, %p2503_p8 }
  0xaf   : > { %2513 = shalt.err (!%p2510_p4)
}
  0xb0   : > { %s2514_s9 = scalar_lea.vmem %s316_s1, 128  ;;  %s2632_s19 = smov [#allocation9]  }
  0xb1   : > { %p2515_p7 = scmp.ne.s32.totalorder %s316_s1, %s2514_s9  ;;  %s2519_s30 = sshll.u32 %s2632_s19, 4  ;;  %s2520_s30 = int_to_ptr.vmem [resolvable:$false] %s2519_s30 }
  0xb2   : > { %s2521_s11 = scalar_lea.vmem %s2520_s30, 256  ;;  %p2522_p13 = scmp.lt.s32.totalorder %s316_s1, %s2520_s30 }
  0xb3   : > { %p2517_p3 = pnand %p2515_p7, %p3231_p11  ;;  %p2523_p6 = scmp.lt.s32.totalorder %s2521_s11, %s2514_s9 }
  0xb5   : > { %p2518_p1 = pneg %p2517_p3  ;;  %p2524_p10 = por %p2523_p6, %p2522_p13 }
  0xb7   : > { %p2525_p0 = pnand %p2524_p10, %p2518_p1 }
  0xb9   : > { %2528 = shalt.err (!%p2525_p0)
}
  0xba   : > { %p3233_p12 = scmp.ne.s32.totalorder %s3223_s12, 0  ;;  %p3234_p8 = scmp.ne.s32.totalorder %s3214_s7, 0 }
  0xbb   : > { %s2937_s28 = sand.u32 (!%p3234_p8), 1, %s2607_s22   ;;  %p3235_p11 = scmp.ne.s32.totalorder (!%p3234_p8), %s3211_s29, 0 }
  0xbc   : > { %2265 = dma.hbm_to_vmem [thread:$0]  (!%p3233_p12), %s2913_s20, 128, %s316_s1, %s2810_s25  }
  0xbd   : > { %324 = sbr.rel (%p3234_p8) target bundleno = 1324 (0x52c), region = 44  ;;  %s2940_s6 = sshll.u32 (!%p3234_p8), %s2937_s28, 3 }
  0xbe   : > { %s327_s21 = scalar_lea.sflag (!%p3234_p8), [#allocation5], %s2937_s28  ;;  %s330_s17 = scalar_lea.vmem (!%p3234_p8), [#allocation4], %s2940_s6 }
  0xc4   : > { %2582 = dma.done.wait (%p3235_p11), %s327_s21, 128  }
  0xc5   : > { %2584 = vsyncadd (%p3235_p11), %s327_s21, 4294967168  ;;  %s335_s25 = sand.u32 1, %s2708_s27   ;;  %s339_s12 = scalar_lea.vmem [#allocation7], %s2940_s6 }
  0xc6   : > { %s336_s7 = scalar_lea.sflag [#allocation8], %s335_s25 }
  0xc7   : > { %2586 = dma.done.wait (%p3235_p11), %s336_s7, 256  }
  0xc8   : > { %2588 = vsyncadd (%p3235_p11), %s336_s7, 4294967040  ;;  %s348_s15 = scalar_lea.vmem [#allocation9], %s2940_s6  ;;  %p3236_p10 = scmp.eq.s32.totalorder %s2708_s27, 0 }
  0xca   : > { %2590 = dma.done.wait (%p3236_p10), [#allocation11], 1024   ;;  %p3237_p5 = pmov %p3236_p10 }
  0xcc   : > { %2592 = vsyncadd (%p3237_p5), [#allocation11], 4294966272  ;;  %p3238_p9 = pmov %p3237_p5 }
  0xcd   : > { %p3239_p2 = pmov %p3237_p5 }
  0xce   : > { %2594 = dma.done.wait (%p3238_p9), [#allocation14], 512  }
  0xcf   : > { %2596 = vsyncadd (%p3239_p2), [#allocation14], 4294966784  ;;  %v2633_v0 = vmov 0.0|0.0   ;;  %vm2634_vm0 = vmmov 0   ;;  %v2635_v1 = vmov 0.0   ;;  %v405_v2 = vld [vmem:[#allocation12] sm:$0xff]  ;;  %v575_v32 = vlaneseq }
  0xd0   : > { %2208 = vmatprep.subr.bf16.mxu0 %v2633_v0  ;;  %2143 = vmatprep.mubr.msk.f32.mxu0 %vm2634_vm0, %v2635_v1  ;;  %v406_v3 = vld [vmem:[#allocation12 + $0x8] sm:$0xff]  ;;  %v407_v4 = vld [vmem:[#allocation12 + $0x10] sm:$0xff]  ;;  %v408_v6 = vld [vmem:[#allocation12 + $0x18] sm:$0xff]  ;;  %vm413_vm1 = vcmask 261120   ;;  %s2636_s27 = smov 32   ;;  %s2637_s29 = smov 96  }
  0xd1   : > { %2214 = vmatprep.subr.bf16.mxu1 %v2633_v0  ;;  %2154 = vmatprep.mubr.msk.f32.mxu1 %vm2634_vm0, %v2635_v1  ;;  %v2209_v5 = vpack.c.bf16 %v406_v3, %v405_v2  ;;  %v2212_v7 = vpack.c.bf16 %v408_v6, %v407_v4  ;;  %v861_v8 = vld [vmem:[#allocation10] sm:$0xff]  ;;  %v410_v10 = vld [vmem:[#allocation13 + $0x8] sm:$0xff]  ;;  %v411_v13 = vld [vmem:[#allocation13 + $0x10] sm:$0xff]  ;;  %s2638_s10 = smov 64   ;;  %v2639_v30 = vmov 1983009808  }
  0xd2   : > { %v409_v9 = vld [vmem:[#allocation13] sm:$0xff]  ;;  %v862_v11 = vld [vmem:[#allocation10 + $0x8] sm:$0xff]  ;;  %v412_v14 = vld [vmem:[#allocation13 + $0x18] sm:$0xff]  ;;  %v573_v31 = vunpack.c.l.s4 %v2639_v30  ;;  %v2640_v33 = vmov 1934713408   ;;  %v576_v36 = vshrl.u32 %v575_v32, 7 }
  0xd3   : > { %2210 = vmatpush3.bf16.msra.mxu0 %v2209_v5  ;;  %v2215_v12 = vpack.c.bf16 %v410_v10, %v409_v9  ;;  %v2218_v15 = vpack.c.bf16 %v412_v14, %v411_v13  ;;  %v403_v16 = vld [vmem:[%s339_s12] sm:$0xff]  ;;  %v2221_v17 = vpack.c.bf16 %v862_v11, %v861_v8  ;;  %v863_v18 = vld [vmem:[#allocation10 + $0x10] sm:$0xff]  ;;  %v864_v19 = vld [vmem:[#allocation10 + $0x18] sm:$0xff]  ;;  %v605_v34 = vunpack.c.l.s4 %v2640_v33  ;;  %s3240_s20 = sld [smem:[#allocation26_spill]]  ;;  %s2101_s13 = sshll.u32 %s2615_s24, 7 }
  0xd4   : > { %2211 = vmatprep.subr.bf16.mxu0 %v2633_v0  ;;  %v2224_v20 = vpack.c.bf16 %v864_v19, %v863_v18  ;;  %v860_v21 = vld [vmem:[%s330_s17] sm:$0xff]  ;;  %v574_v35 = vunpack.c.0.s8 %v573_v31  ;;  %vm1398_vm2 = vcmask 64512   ;;  %vm1884_vm3 = vcmask 523264   ;;  %s398_s1 = scalar_lea.vmem [#allocation15], %s2940_s6  ;;  %s3241_s16 = sld [smem:[#allocation30_spill]] }
  0xd5   : > { %2216 = vmatpush3.bf16.msra.mxu1 %v2215_v12  ;;  %v404_v22 = vld [vmem:[%s348_s15] sm:$0xff]  ;;  %v606_v39 = vunpack.c.0.s8 %v605_v34  ;;  %s1904_s3 = sshll.u32 %s398_s1, 4  ;;  %vm1886_vm4 = vcmask 785408   ;;  %s1890_s8 = scalar_lea.sflag [#allocation6], %s2937_s28  ;;  %s3125_s3 = int_to_ptr.vmem [resolvable:$true] %s1904_s3 }
  0xd6   : > { %2217 = vmatprep.subr.bf16.mxu1 %v2633_v0  ;;  %v2998_v40 = vsub.s32 %v574_v35, %v576_v36  ;;  %s2529_s9 = scalar_lea.vmem %s3125_s3, 128  ;;  %s2641_s24 = smov [#allocation15]  }
  0xd7   : > { %2213 = vmatpush3.bf16.msra.mxu0 %v2212_v7  ;;  %v3000_v46 = vsub.s32 %v606_v39, %v576_v36  ;;  %p2530_p4 = scmp.ne.s32.totalorder %s3125_s3, %s2529_s9  ;;  %s2533_s19 = sshll.u32 %s2641_s24, 4  ;;  %s2534_s19 = int_to_ptr.vmem [resolvable:$false] %s2533_s19 }
  0xd8   : > { %2220 = vmatprep.subr.bf16.mxu0 %v2633_v0  ;;  %s2535_s30 = scalar_lea.vmem %s2534_s19, 256  ;;  %p2536_p13 = scmp.lt.s32.totalorder %s3125_s3, %s2534_s19 }
  0xd9   : > { %2219 = vmatpush3.bf16.msra.mxu1 %v2218_v15  ;;  %p3242_p7 = scmp.ne.s32.totalorder %s3240_s20, 0  ;;  %p2537_p6 = scmp.lt.s32.totalorder %s2535_s30, %s2529_s9 }
  0xda   : > { %2144 = vmatmul.mubr.msk.f32.vlgmr.msra.gmra.mrb[0].mxu0 %vm413_vm1, %v403_v16  ;;  %2168 = vmatprep.subr.mxu1 %v2635_v1  ;;  %s3123_s26 = scalar_lea.hbm %s3241_s16, %s2101_s13 }
  0xdb   : > { %2222 = vmatpush3.bf16.msra.mxu0 %v2221_v17  ;;  %2165 = vmatprep.mubr.msk.f32.mxu0 %vm2634_vm0, %v2635_v1  ;;  %p2531_p3 = pnand %p2530_p4, %p3242_p7  ;;  %p2538_p0 = por %p2537_p6, %p2536_p13 }
  0xdc   : > { %2223 = vmatprep.subr.bf16.mxu0 %v2633_v0  ;;  %2155 = vmatmul.mubr.msk.f32.vlgmr.msra.gmra.mrb[0].mxu1 %vm413_vm1, %v404_v22 }
  0xdd   : > { %2170 = vmatprep.mubr.msk.f32.mxu1 %vm2634_vm0, %v2635_v1  ;;  %p2532_p1 = pneg %p2531_p3 }
  0xdf   : > { %2225 = vmatpush3.bf16.msra.mxu0 %v2224_v20  ;;  %p2539_p12 = pnand %p2538_p0, %p2532_p1 }
  0xe0   : > { %2178 = vmatprep.subr.mxu0 %v2635_v1 }
  0xe2   : > { %2166 = vmatmul.mubr.msk.f32.vlgmr.msra.gmra.mrb[2].mxu0 %vm413_vm1, %v860_v21 }
  0xe3   : > { %2180 = vmatprep.mubr.msk.f32.mxu0 %vm2634_vm0, %v2635_v1 }
 0x1ad   : > { %v483_v23 = vpop.f32.mrb[0].mxu0 }
 0x1ae   : > { %567 = vrot.lane.b32.xlu1 %v483_v23, %s2636_s27  ;;  %561 = vrot.lane.b32.xlu0 %v483_v23, %s2637_s29  ;;  %v2145_v24 = vpop.f32.mrb[1].mxu0 }
 0x1af   : > { %v2990_v28 = vpop.f32.mrb[0].mxu1 }
 0x1b0   : > { %v2156_v29 = vpop.f32.mrb[1].mxu1 }
 0x1b2   : > { %564 = vrot.lane.b32.xlu0 %v483_v23, %s2638_s10 }
 0x1b5   : > { %v935_v25 = vpop.f32.mrb[2].mxu0 }
 0x1b6   : > { %v939_v26 = vmul.f32 0.17677669, %v935_v25  ;;  %v2167_v27 = vpop.f32.mrb[3].mxu0 }
 0x1b8   : > { %944 = vrot.lane.b32.xlu0 %v939_v26, %s2638_s10  ;;  %941 = vrot.lane.b32.xlu1 %v939_v26, %s2637_s29 }
 0x1bc   : > { %947 = vrot.lane.b32.xlu1 %v939_v26, %s2636_s27  ;;  %711 = vrot.lane.b32.xlu0 %v2990_v28, %s2637_s29 }
 0x1c0   : > { %714 = vrot.lane.b32.xlu1 %v2990_v28, %s2638_s10  ;;  %717 = vrot.lane.b32.xlu0 %v2990_v28, %s2636_s27 }
 0x220   : > { %v568_v37 = vpop.permute.xlu1 %567  ;;  %v562_v38 = vpop.permute.xlu0 %561 }
 0x221   : > { %v586_v41 = vcombine.low %v562_v38, %v568_v37  ;;  %v587_v42 = vcombine.high %v562_v38, %v568_v37 }
 0x223   : > { %v594_v47 = vrot.slane %v586_v41, %v2998_v40  ;;  %v601_v48 = vrot.slane %v587_v42, %v2998_v40 }
 0x224   : > { %v565_v43 = vpop.permute.xlu0 %564 }
 0x225   : > { %v570_v44 = vcombine.low %v483_v23, %v565_v43  ;;  %v571_v45 = vcombine.high %v483_v23, %v565_v43 }
 0x227   : > { %v578_v49 = vrot.slane %v570_v44, %v2998_v40  ;;  %v585_v50 = vrot.slane %v571_v45, %v2998_v40 }
 0x229   : > { %v602_v51 = vcombine.low %v578_v49, %v594_v47  ;;  %v603_v52 = vcombine.high %v578_v49, %v594_v47  ;;  %v618_v53 = vcombine.low %v585_v50, %v601_v48  ;;  %v619_v54 = vcombine.high %v585_v50, %v601_v48 }
 0x22a   : > { %v942_v55 = vpop.permute.xlu1 %941  ;;  %v945_v60 = vpop.permute.xlu0 %944 }
 0x22b   : > { %v610_v56 = vrot.slane %v602_v51, %v3000_v46  ;;  %v617_v57 = vrot.slane %v603_v52, %v3000_v46  ;;  %v626_v58 = vrot.slane %v618_v53, %v3000_v46  ;;  %v633_v59 = vrot.slane %v619_v54, %v3000_v46 }
 0x22c   : > { %v950_v2 = vcombine.low %v939_v26, %v945_v60  ;;  %v951_v3 = vcombine.high %v939_v26, %v945_v60 }
 0x22d   : > { %v638_v61 = vcombine.low %v610_v56, %v617_v57  ;;  %v2079_v62 = vcombine.high %v610_v56, %v617_v57  ;;  %v654_v63 = vcombine.low %v626_v58, %v633_v59  ;;  %v2080_v0 = vcombine.high %v626_v58, %v633_v59 }
 0x22e   : > { %v948_v4 = vpop.permute.xlu1 %947  ;;  %v958_v15 = vrot.slane %v950_v2, %v2998_v40  ;;  %v965_v16 = vrot.slane %v951_v3, %v2998_v40 }
 0x22f   : > { %v645_v5 = vrot.slane %v638_v61, %v2998_v40  ;;  %v653_v6 = vrot.slane %v2079_v62, %v2998_v40  ;;  %v661_v7 = vrot.slane %v654_v63, %v2998_v40  ;;  %v669_v8 = vrot.slane %v2080_v0, %v2998_v40  ;;  %v712_v62 = vpop.permute.xlu0 %711 }
 0x230   : > { %v966_v9 = vcombine.low %v942_v55, %v948_v4  ;;  %v967_v10 = vcombine.high %v942_v55, %v948_v4 }
 0x231   : > { %v670_v11 = vcombine.low %v645_v5, %v653_v6  ;;  %v671_v12 = vcombine.high %v645_v5, %v653_v6  ;;  %v686_v13 = vcombine.low %v661_v7, %v669_v8  ;;  %v687_v14 = vcombine.high %v661_v7, %v669_v8 }
 0x232   : > { %v974_v17 = vrot.slane %v966_v9, %v2998_v40  ;;  %v981_v18 = vrot.slane %v967_v10, %v2998_v40  ;;  %v715_v63 = vpop.permute.xlu1 %714 }
 0x233   : > { %v678_v19 = vrot.slane %v670_v11, %v3000_v46  ;;  %v685_v20 = vrot.slane %v671_v12, %v3000_v46  ;;  %v694_v21 = vrot.slane %v686_v13, %v3000_v46  ;;  %v701_v22 = vrot.slane %v687_v14, %v3000_v46  ;;  %v718_v3 = vpop.permute.xlu0 %717 }
 0x234   : > { %v982_v23 = vcombine.low %v958_v15, %v974_v17  ;;  %v983_v24 = vcombine.high %v958_v15, %v974_v17  ;;  %v998_v25 = vcombine.low %v965_v16, %v981_v18  ;;  %v999_v26 = vcombine.high %v965_v16, %v981_v18 }
 0x235   : > { %v702_v27 = vcombine.low %v678_v19, %v694_v21  ;;  %v703_v29 = vcombine.high %v678_v19, %v694_v21  ;;  %v704_v30 = vcombine.low %v685_v20, %v701_v22  ;;  %v705_v31 = vcombine.high %v685_v20, %v701_v22 }
 0x236   : > { %v990_v32 = vrot.slane %v982_v23, %v3000_v46  ;;  %v997_v33 = vrot.slane %v983_v24, %v3000_v46  ;;  %v1006_v34 = vrot.slane %v998_v25, %v3000_v46  ;;  %v1013_v35 = vrot.slane %v999_v26, %v3000_v46 }
 0x237   : > { %706 = vst.msk [vmem:[#allocation2] sm:$0xff] %vm413_vm1, %v702_v27  ;;  %707 = vst.msk [vmem:[#allocation2 + $0x8] sm:$0xff] %vm413_vm1, %v703_v29  ;;  %v720_v0 = vcombine.low %v2990_v28, %v715_v63  ;;  %v721_v2 = vcombine.high %v2990_v28, %v715_v63  ;;  %v736_v4 = vcombine.low %v712_v62, %v718_v3 }
 0x238   : > { %708 = vst.msk [vmem:[#allocation2 + $0x10] sm:$0xff] %vm413_vm1, %v704_v30  ;;  %709 = vst.msk [vmem:[#allocation2 + $0x18] sm:$0xff] %vm413_vm1, %v705_v31  ;;  %v1018_v36 = vcombine.low %v990_v32, %v997_v33  ;;  %v2084_v37 = vcombine.high %v990_v32, %v997_v33  ;;  %v1034_v38 = vcombine.low %v1006_v34, %v1013_v35 }
 0x239   : > { %v2085_v39 = vcombine.high %v1006_v34, %v1013_v35  ;;  %v737_v5 = vcombine.high %v712_v62, %v718_v3  ;;  %v728_v6 = vrot.slane %v720_v0, %v2998_v40  ;;  %v735_v7 = vrot.slane %v721_v2, %v2998_v40 }
 0x23a   : > { %v1025_v41 = vrot.slane %v1018_v36, %v2998_v40  ;;  %v1033_v42 = vrot.slane %v2084_v37, %v2998_v40  ;;  %v1041_v43 = vrot.slane %v1034_v38, %v2998_v40  ;;  %v744_v8 = vrot.slane %v736_v4, %v2998_v40 }
 0x23b   : > { %v1049_v44 = vrot.slane %v2085_v39, %v2998_v40  ;;  %v751_v9 = vrot.slane %v737_v5, %v2998_v40 }
 0x23c   : > { %v1050_v45 = vcombine.low %v1025_v41, %v1033_v42  ;;  %v1051_v47 = vcombine.high %v1025_v41, %v1033_v42  ;;  %v752_v10 = vcombine.low %v728_v6, %v744_v8  ;;  %v753_v11 = vcombine.high %v728_v6, %v744_v8 }
 0x23d   : > { %v1066_v48 = vcombine.low %v1041_v43, %v1049_v44  ;;  %v1067_v49 = vcombine.high %v1041_v43, %v1049_v44  ;;  %v768_v12 = vcombine.low %v735_v7, %v751_v9  ;;  %v769_v13 = vcombine.high %v735_v7, %v751_v9 }
 0x23e   : > { %v1086_v50 = vld [vmem:[#allocation2] sm:$0xff]  ;;  %v1058_v52 = vrot.slane %v1050_v45, %v3000_v46  ;;  %v1065_v54 = vrot.slane %v1051_v47, %v3000_v46  ;;  %v1087_v58 = vld [vmem:[#allocation2 + $0x8] sm:$0xff]  ;;  %v760_v14 = vrot.slane %v752_v10, %v3000_v46  ;;  %v767_v15 = vrot.slane %v753_v11, %v3000_v46 }
 0x23f   : > { %v1088_v51 = vld [vmem:[#allocation2 + $0x10] sm:$0xff]  ;;  %v1074_v53 = vrot.slane %v1066_v48, %v3000_v46  ;;  %v1081_v55 = vrot.slane %v1067_v49, %v3000_v46  ;;  %2169 = vmatpush3.xpose.msk.msra.mxu1 %vm413_vm1, %v1086_v50  ;;  %v1089_v60 = vld [vmem:[#allocation2 + $0x18] sm:$0xff]  ;;  %v776_v28 = vrot.slane %v768_v12, %v3000_v46  ;;  %v783_v16 = vrot.slane %v769_v13, %v3000_v46 }
 0x240   : > { %2179 = vmatpush3.xpose.msk.msra.mxu0 %vm413_vm1, %v1088_v51  ;;  %2173 = vmatprep.subr.mxu1 %v2635_v1  ;;  %v788_v17 = vcombine.low %v760_v14, %v767_v15  ;;  %v2081_v18 = vcombine.high %v760_v14, %v767_v15 }
 0x241   : > { %v1082_v56 = vcombine.low %v1058_v52, %v1074_v53  ;;  %v1084_v57 = vcombine.low %v1065_v54, %v1081_v55  ;;  %2188 = vmatprep.subr.mxu0 %v2635_v1  ;;  %v1083_v59 = vcombine.high %v1058_v52, %v1074_v53  ;;  %v1085_v61 = vcombine.high %v1065_v54, %v1081_v55 }
 0x242   : > { %v804_v19 = vcombine.low %v776_v28, %v783_v16  ;;  %v2082_v20 = vcombine.high %v776_v28, %v783_v16  ;;  %v795_v21 = vrot.slane %v788_v17, %v2998_v40  ;;  %v803_v22 = vrot.slane %v2081_v18, %v2998_v40 }
 0x243   : > { %2171 = vmatmul.mubr.msk.f32.vlgmr.msra.gmra.mrb[2].mxu1 %vm413_vm1, %v1082_v56  ;;  %2181 = vmatmul.mubr.msk.f32.vlgmr.msra.gmra.mrb[4].mxu0 %vm413_vm1, %v1084_v57 }
 0x244   : > { %2174 = vmatpush3.xpose.msk.msra.mxu1 %vm413_vm1, %v1087_v58  ;;  %2175 = vmatprep.mubr.msk.f32.mxu1 %vm2634_vm0, %v2635_v1  ;;  %v811_v23 = vrot.slane %v804_v19, %v2998_v40  ;;  %v819_v24 = vrot.slane %v2082_v20, %v2998_v40  ;;  %v820_v25 = vcombine.low %v795_v21, %v803_v22 }
 0x245   : > { %2183 = vmatprep.subr.mxu1 %v2635_v1  ;;  %2190 = vmatprep.mubr.msk.f32.mxu0 %vm2634_vm0, %v2635_v1  ;;  %v821_v26 = vcombine.high %v795_v21, %v803_v22 }
 0x246   : > { %v836_v27 = vcombine.low %v811_v23, %v819_v24  ;;  %v837_v29 = vcombine.high %v811_v23, %v819_v24  ;;  %v828_v30 = vrot.slane %v820_v25, %v3000_v46 }
 0x247   : > { %2176 = vmatmul.mubr.msk.f32.vlgmr.msra.gmra.mrb[4].mxu1 %vm413_vm1, %v1083_v59  ;;  %v835_v31 = vrot.slane %v821_v26, %v3000_v46 }
 0x248   : > { %2184 = vmatpush3.xpose.msk.msra.mxu1 %vm413_vm1, %v1089_v60  ;;  %2185 = vmatprep.mubr.msk.f32.mxu1 %vm2634_vm0, %v2635_v1  ;;  %v844_v32 = vrot.slane %v836_v27, %v3000_v46  ;;  %v851_v33 = vrot.slane %v837_v29, %v3000_v46 }
 0x249   : > { %2193 = vmatprep.subr.mxu1 %v2635_v1 }
 0x24a   : > { %v852_v34 = vcombine.low %v828_v30, %v844_v32  ;;  %v853_v35 = vcombine.high %v828_v30, %v844_v32  ;;  %v854_v36 = vcombine.low %v835_v31, %v851_v33  ;;  %v855_v37 = vcombine.high %v835_v31, %v851_v33 }
 0x24b   : > { %2186 = vmatmul.mubr.msk.f32.vlgmr.msra.gmra.mrb[6].mxu1 %vm413_vm1, %v1085_v61 }
 0x24c   : > { %2195 = vmatprep.mubr.msk.f32.mxu1 %vm2634_vm0, %v2635_v1  ;;  %856 = vst.msk [vmem:[#allocation3] sm:$0xff] %vm413_vm1, %v852_v34  ;;  %857 = vst.msk [vmem:[#allocation3 + $0x8] sm:$0xff] %vm413_vm1, %v853_v35 }
 0x24d   : > { %858 = vst.msk [vmem:[#allocation3 + $0x10] sm:$0xff] %vm413_vm1, %v854_v36  ;;  %859 = vst.msk [vmem:[#allocation3 + $0x18] sm:$0xff] %vm413_vm1, %v855_v37 }
 0x253   : > { %v1090_v38 = vld [vmem:[#allocation3] sm:$0xff]  ;;  %v1091_v39 = vld [vmem:[#allocation3 + $0x8] sm:$0xff] }
 0x254   : > { %2189 = vmatpush3.msra.mxu0 %v1090_v38  ;;  %2194 = vmatpush3.msra.mxu1 %v1091_v39  ;;  %v1092_v4 = vld [vmem:[#allocation3 + $0x10] sm:$0xff]  ;;  %v1093_v7 = vld [vmem:[#allocation3 + $0x18] sm:$0xff] }
 0x255   : > { %2198 = vmatprep.subr.mxu0 %v2635_v1  ;;  %2203 = vmatprep.subr.mxu1 %v2635_v1 }
 0x316   : > { %v1166_v41 = vpop.f32.mrb[2].mxu1  ;;  %v1318_v42 = vpop.f32.mrb[4].mxu0 }
 0x317   : > { %v2172_v43 = vpop.f32.mrb[3].mxu1  ;;  %v2182_v44 = vpop.f32.mrb[5].mxu0  ;;  %v1399_v45 = vsel %vm1398_vm2, %v1166_v41, -inf  ;;  %v1405_v53 = vsel %vm1398_vm2, %v1318_v42, -inf }
 0x318   : > { %1400 = vmax.xlane.f32.xlu0 %v1399_v45 }
 0x31a   : > { %v1242_v47 = vpop.f32.mrb[4].mxu1 }
 0x31b   : > { %v2177_v48 = vpop.f32.mrb[5].mxu1  ;;  %v1402_v49 = vsel %vm1398_vm2, %v1242_v47, -inf }
 0x31c   : > { %1403 = vmax.xlane.f32.xlu1 %v1402_v49 }
 0x31e   : > { %v1394_v50 = vpop.f32.mrb[6].mxu1 }
 0x31f   : > { %v2187_v51 = vpop.f32.mrb[7].mxu1  ;;  %v1408_v52 = vsel %vm1398_vm2, %v1394_v50, -inf }
 0x320   : > { %1409 = vmax.xlane.f32.xlu0 %v1408_v52  ;;  %1406 = vmax.xlane.f32.xlu1 %v1405_v53 }
 0x3a5   : > { %v1401_v54 = vpop.xlane.xlu0 %1400 }
 0x3a6   : > { %v1411_v55 = vsub.f32 %v1166_v41, %v1401_v54 }
 0x3a8   : > { %v1415_v56 = vmul.f32 1.442695, %v1411_v55 }
 0x3a9   : > { %v1404_v57 = vpop.xlane.xlu1 %1403 }
 0x3aa   : > { %2339 = vpow2.f32 %v1415_v56  ;;  %v1412_v58 = vsub.f32 %v1242_v47, %v1404_v57 }
 0x3ac   : > { %v1417_v59 = vmul.f32 1.442695, %v1412_v58 }
 0x3ad   : > { %v1410_v60 = vpop.xlane.xlu0 %1409  ;;  %v1407_v61 = vpop.xlane.xlu1 %1406 }
 0x3ae   : > { %2341 = vpow2.f32 %v1417_v59  ;;  %v1414_v62 = vsub.f32 %v1394_v50, %v1410_v60  ;;  %v1413_v63 = vsub.f32 %v1318_v42, %v1407_v61 }
 0x3b0   : > { %v1421_v0 = vmul.f32 1.442695, %v1414_v62  ;;  %v1419_v2 = vmul.f32 1.442695, %v1413_v63 }
 0x3b2   : > { %2343 = vpow2.f32 %v1421_v0 }
 0x3b3   : > { %2345 = vpow2.f32 %v1419_v2 }
 0x3b4   : > { %v2340_v3 = vpop.eup %2339 }
 0x3b5   : > { %2191 = vmatmul.mubr.msk.f32.vlgmr.msra.gmra.mrb[6].mxu0 %vm1398_vm2, %v2340_v3  ;;  %v1423_v5 = vsel %vm1398_vm2, %v2340_v3, 0.0 }
 0x3b6   : > { %2199 = vmatpush3.msra.mxu0 %v1092_v4  ;;  %1424 = vadd.xlane.f32.xlu0 %v1423_v5 }
 0x3b7   : > { %2200 = vmatprep.mubr.msk.f32.mxu0 %vm2634_vm0, %v2635_v1 }
 0x3b8   : > { %v2342_v6 = vpop.eup %2341 }
 0x3b9   : > { %2196 = vmatmul.mubr.msk.f32.vlgmr.msra.gmra.mrb[8].mxu1 %vm1398_vm2, %v2342_v6  ;;  %v1426_v8 = vsel %vm1398_vm2, %v2342_v6, 0.0 }
 0x3ba   : > { %2204 = vmatpush3.msra.mxu1 %v1093_v7  ;;  %1427 = vadd.xlane.f32.xlu1 %v1426_v8 }
 0x3bb   : > { %2205 = vmatprep.mubr.msk.f32.mxu1 %vm2634_vm0, %v2635_v1 }
 0x3bc   : > { %v2344_v9 = vpop.eup %2343 }
 0x3bd   : > { %v2346_v10 = vpop.eup %2345  ;;  %2206 = vmatmul.mubr.msk.f32.vlgmr.msra.gmra.mrb[10].mxu1 %vm1398_vm2, %v2344_v9  ;;  %v1432_v11 = vsel %vm1398_vm2, %v2344_v9, 0.0 }
 0x3be   : > { %2201 = vmatmul.mubr.msk.f32.vlgmr.msra.gmra.mrb[8].mxu0 %vm1398_vm2, %v2346_v10  ;;  %1433 = vadd.xlane.f32.xlu1 %v1432_v11  ;;  %v1429_v12 = vsel %vm1398_vm2, %v2346_v10, 0.0 }
 0x3bf   : > { %1430 = vadd.xlane.f32.xlu0 %v1429_v12 }
 0x443   : > { %v1425_v14 = vpop.xlane.xlu0 %1424 }
 0x444   : > { %2347 = vrcp.f32 %v1425_v14 }
 0x447   : > { %v1428_v13 = vpop.xlane.xlu1 %1427 }
 0x448   : > { %2349 = vrcp.f32 %v1428_v13 }
 0x44b   : > { %v1434_v15 = vpop.xlane.xlu1 %1433 }
 0x44c   : > { %v1431_v28 = vpop.xlane.xlu0 %1430  ;;  %2351 = vrcp.f32 %v1434_v15 }
 0x44d   : > { %2353 = vrcp.f32 %v1431_v28 }
 0x44e   : > { %v2348_v19 = vpop.eup %2347 }
 0x452   : > { %v2350_v20 = vpop.eup %2349 }
 0x456   : > { %v2352_v21 = vpop.eup %2351 }
 0x457   : > { %v2354_v23 = vpop.eup %2353 }
 0x488   : > { %v1504_v1 = vpop.f32.mrb[6].mxu0 }
 0x489   : > { %v2192_v16 = vpop.f32.mrb[7].mxu0  ;;  %v1728_v29 = vmul.f32 %v2348_v19, %v1504_v1 }
 0x48c   : > { %v1577_v17 = vpop.f32.mrb[8].mxu1 }
 0x48d   : > { %v2197_v18 = vpop.f32.mrb[9].mxu1  ;;  %v1730_v24 = vmul.f32 %v2350_v20, %v1577_v17 }
 0x490   : > { %v1723_v22 = vpop.f32.mrb[10].mxu1 }
 0x491   : > { %v1650_v25 = vpop.f32.mrb[8].mxu0  ;;  %v1734_v26 = vmul.f32 %v2352_v21, %v1723_v22  ;;  %v2207_v27 = vpop.f32.mrb[11].mxu1 }
 0x492   : > { %v1732_v30 = vmul.f32 %v2354_v23, %v1650_v25  ;;  %v2202_v31 = vpop.f32.mrb[9].mxu0 }
 0x493   : > { %v1751_v32 = vcombine.low %v1730_v24, %v1734_v26  ;;  %v1752_v33 = vcombine.high %v1730_v24, %v1734_v26 }
 0x494   : > { %v1735_v34 = vcombine.low %v1728_v29, %v1732_v30  ;;  %v1736_v35 = vcombine.high %v1728_v29, %v1732_v30 }
 0x495   : > { %v1759_v36 = vrot.slane %v1751_v32, %v2998_v40  ;;  %v1766_v37 = vrot.slane %v1752_v33, %v2998_v40 }
 0x496   : > { %v1743_v38 = vrot.slane %v1735_v34, %v2998_v40  ;;  %v1750_v39 = vrot.slane %v1736_v35, %v2998_v40 }
 0x498   : > { %v1767_v41 = vcombine.low %v1743_v38, %v1759_v36  ;;  %v1768_v42 = vcombine.high %v1743_v38, %v1759_v36  ;;  %v1783_v43 = vcombine.low %v1750_v39, %v1766_v37  ;;  %v1784_v44 = vcombine.high %v1750_v39, %v1766_v37 }
 0x49a   : > { %v1775_v45 = vrot.slane %v1767_v41, %v3000_v46  ;;  %v1782_v47 = vrot.slane %v1768_v42, %v3000_v46  ;;  %v1791_v48 = vrot.slane %v1783_v43, %v3000_v46  ;;  %v1798_v49 = vrot.slane %v1784_v44, %v3000_v46 }
 0x49c   : > { %v1803_v50 = vcombine.low %v1775_v45, %v1782_v47  ;;  %v2098_v51 = vcombine.high %v1775_v45, %v1782_v47  ;;  %v1819_v52 = vcombine.low %v1791_v48, %v1798_v49  ;;  %v2099_v53 = vcombine.high %v1791_v48, %v1798_v49 }
 0x49e   : > { %v1810_v54 = vrot.slane %v1803_v50, %v2998_v40  ;;  %v1818_v55 = vrot.slane %v2098_v51, %v2998_v40  ;;  %v1826_v56 = vrot.slane %v1819_v52, %v2998_v40  ;;  %v1834_v57 = vrot.slane %v2099_v53, %v2998_v40 }
 0x4a0   : > { %v1836_v58 = vcombine.high %v1810_v54, %v1818_v55  ;;  %v1852_v59 = vcombine.high %v1826_v56, %v1834_v57  ;;  %v1835_v60 = vcombine.low %v1810_v54, %v1818_v55  ;;  %v1851_v61 = vcombine.low %v1826_v56, %v1834_v57 }
 0x4a2   : > { %v1850_v62 = vrot.slane %v1836_v58, %v3000_v46  ;;  %v1866_v63 = vrot.slane %v1852_v59, %v3000_v46  ;;  %v1843_v0 = vrot.slane %v1835_v60, %v3000_v46  ;;  %v1859_v2 = vrot.slane %v1851_v61, %v3000_v46 }
 0x4a4   : > { %v1869_v3 = vcombine.low %v1850_v62, %v1866_v63  ;;  %v1868_v4 = vcombine.high %v1843_v0, %v1859_v2  ;;  %v1870_v5 = vcombine.high %v1850_v62, %v1866_v63  ;;  %v1867_v6 = vcombine.low %v1843_v0, %v1859_v2 }
 0x4a6   : > { %1876 = vrot.lane.b32.xlu1 %v1869_v3, %s2638_s10  ;;  %1872 = vrot.lane.b32.xlu0 %v1868_v4, %s2636_s27 }
 0x4aa   : > { %1880 = vrot.lane.b32.xlu1 %v1870_v5, %s2637_s29 }
 0x518   : > { %v1877_v40 = vpop.permute.xlu1 %1876  ;;  %v1873_v7 = vpop.permute.xlu0 %1872 }
 0x519   : > { %v1883_v8 = vsel %vm413_vm1, %v1867_v6, %v1873_v7 }
 0x51a   : > { %v1885_v9 = vsel %vm1884_vm3, %v1883_v8, %v1877_v40 }
 0x51c   : > { %v1881_v46 = vpop.permute.xlu1 %1880 }
 0x51d   : > { %v1887_v10 = vsel %vm1886_vm4, %v1885_v9, %v1881_v46 }
 0x51e   : > { %1888 = vst [vmem:[%s398_s1] sm:$0xff] %v1887_v10 }
 0x51f   : > { %2542 = shalt.err (!%p2539_p12)
}
 0x520   : > { %s2543_s11 = scalar_lea.hbm %s3123_s26, 128  ;;  %s2547_s21 = scalar_lea.hbm %s3241_s16, 256 }
 0x521   : > { %p2544_p8 = scmp.ne.s32.totalorder %s3123_s26, %s2543_s11  ;;  %p2548_p5 = scmp.lt.u32.totalorder %s3123_s26, %s3241_s16 }
 0x522   : > { %p2549_p9 = scmp.lt.u32.totalorder %s2547_s21, %s2543_s11  ;;  %p2551_p4 = scmp.lt.u32.totalorder %s2543_s11, %s3123_s26 }
 0x523   : > { %p2545_p11 = pnand %p2544_p8, %p3242_p7 }
 0x524   : > { %p2550_p2 = por %p2549_p9, %p2548_p5 }
 0x525   : > { %p2546_p10 = pneg %p2545_p11 }
 0x526   : > { %p2552_p3 = por %p2551_p4, %p2550_p2 }
 0x528   : > { %p2553_p1 = pnand %p2552_p3, %p2546_p10 }
 0x52a   : > { %2556 = shalt.err (!%p2553_p1)
}
 0x52b   : > { %2244 = dma.vmem_to_hbm [thread:$0]  (%p3242_p7), %s3125_s3, 128, %s3123_s26, %s1890_s8  }
 0x52c PF: > { %s3243_s7 = sld [smem:[#allocation21_spill]]  ;;  %s3244_s12 = sld [smem:[#allocation24_spill]] }
 0x52d   : > { %s3245_s15 = sld [smem:[#allocation23_spill]] }
 0x532   : > { %s1916_s27 = sand.u32 1, %s3243_s7   ;;  %p3246_p13 = scmp.ne.s32.totalorder %s3244_s12, 0 }
 0x533   : > { %p3247_p6 = scmp.ge.s32.totalorder %s3245_s15, 2  ;;  %s1917_s29 = scalar_lea.sflag [#allocation6], %s1916_s27 }
 0x535   : > { %p2267_p0 = pnand %p3247_p6, %p3246_p13 }
 0x537   : > { %2598 = dma.done.wait (!%p2267_p0), %s1917_s29, 128  }
 0x538   : > { %2600 = vsyncadd (!%p2267_p0), %s1917_s29, 4294967168  ;;  %s27_s26 = sadd.s32 1, %s3245_s15   ;;  %s3248_s10 = sld [smem:[#allocation27_spill]] }
 0x539   : > { %p24_p12 = scmp.ge.s32.totalorder %s27_s26, 4   ;;  %s3249_s24 = sld [smem:[#allocation22_spill]] }
 0x53a   : > { %s3250_s25 = sld [smem:[#allocation25_spill]]  ;;  %s3251_s21 = smov %s2607_s22 }
 0x53b   : > { %s3252_s22 = smov %s2611_s23  ;;  %26 = sbr.rel (!%p24_p12) target bundleno = 14 (0xe), region = 129 }
 0x53e   : > { %s3253_s23 = smov %s3248_s10 }
 0x542   :  { %1922 = vsyncpa [#allocation5], 1 }
 0x543   :  { %1924 = vsyncpa [#allocation5 + $0x1], 1 }
 0x544   :  { %1925 = vsyncpa [#allocation8], 1 }
 0x545   :  { %1927 = vsyncpa [#allocation8 + $0x1], 1 }
 0x546   :  { %1928 = vsyncpa [#allocation11], 1 }
 0x547   :  { %1929 = vsyncpa [#allocation14], 1 }
 0x548   :  { %1930 = vsyncpa [#allocation6], 1 }
 0x549   :  { %1932 = vsyncpa [#allocation6 + $0x1], 1 }

</bundles_post_ra>
